<compile_context>
chip_gen: v7x
topology: tpu7x:2x2x1
jax: 0.10.0
libtpu: 0.0.40
codegen_flags: <defaults>
</compile_context>

<pallas_src>
import jax
import jax.numpy as jnp
from jax.experimental import pallas as pl
from jax.experimental.pallas import tpu as pltpu

D_IN = 28 * 28        # 784
H1, H2, D_OUT = 300, 200, 10
H1P, H2P, OUTP = 384, 256, 128   # lane-padded (multiples of 128)


def _round_up(x, m):
    return ((x + m - 1) // m) * m


def _sigmoid_f32(z):
    # f32 math (v5e has no bf16 VPU/EUP); exp and approx reciprocal both run on
    # the otherwise-idle EUP slot, co-issued with the MXU push.
    return pl.reciprocal(1.0 + jnp.exp(-z), approx=True)


def mlp3_kernel(x_ref, w1_ref, w2_ref, w3_ref, o_ref):
    # x_ref : [TB, 784]  f32 or bf16 (batch tile; cast to bf16 for the MXU)
    # w1_ref: [784, 384] bf16  (fc1.weight.T, zero-padded cols)
    # w2_ref: [384, 256] bf16  (fc2.weight.T, zero-padded rows/cols)
    # w3_ref: [256, 128] bf16  (fc3.weight.T, zero-padded rows/cols)
    # o_ref : [TB, 128]  bf16  (logits in cols [:10], zeros elsewhere)
    x = x_ref[...].astype(jnp.bfloat16)

    h1 = _sigmoid_f32(jnp.dot(x, w1_ref[...],
                              preferred_element_type=jnp.float32))
    h2 = _sigmoid_f32(jnp.dot(h1.astype(jnp.bfloat16), w2_ref[...],
                              preferred_element_type=jnp.float32))
    out = jnp.dot(h2.astype(jnp.bfloat16), w3_ref[...],
                  preferred_element_type=jnp.float32)
    # bf16 store -> lane-dense, half the HBM writeback bytes.
    o_ref[...] = out.astype(o_ref.dtype)


def prepare_weights(w1, w2, w3):
    """One-time weight prep: transpose to [in, out], zero-pad to lane multiples,
    cast to bf16.  w1: [300, 784], w2: [200, 300], w3: [10, 200] (PyTorch layout).
    Padded rows/cols MUST stay exactly zero for correctness."""
    bf = jnp.bfloat16
    w1p = jnp.zeros((D_IN, H1P), bf).at[:, :H1].set(w1.T.astype(bf))
    w2p = jnp.zeros((H1P, H2P), bf).at[:H1, :H2].set(w2.T.astype(bf))
    w3p = jnp.zeros((H2P, OUTP), bf).at[:H2, :D_OUT].set(w3.T.astype(bf))
    return w1p, w2p, w3p


def _choose_tb(B, max_tb):
    """Pick the batch tile.

    - Whole batch in one tile (rounded to 8 sublanes) when it fits -> no waste.
    - Otherwise pick the multiple of 128 (<= max_tb) minimizing
      padded_rows + per-step overhead.  ~0.35 us of grid-step overhead is worth
      roughly 150 f32 x-rows of DMA, so fold it into the row count; this keeps
      big tiles unless their round-up padding costs more than the saved steps.
    """
    if B <= max_tb:
        return _round_up(B, 8)
    best_tb, best_cost = None, None
    for tb in range(max_tb - (max_tb % 128), 127, -128):
        b_pad = _round_up(B, tb)
        cost = b_pad + 150 * (b_pad // tb)
        if best_cost is None or cost < best_cost:
            best_tb, best_cost = tb, cost
    return best_tb


def nn3layer_forward(x, w1p, w2p, w3p, *, max_tb=1024):
    """Forward pass matching PyTorch NN3layer.

    x: [B, 784] (f32 or bf16 -- bf16 halves the dominant HBM read if the data
    pipeline can deliver it).  w1p/w2p/w3p: outputs of prepare_weights.
    Returns logits [B, 10] f32.
    """
    B, d = x.shape
    assert d == D_IN

    TB = _choose_tb(B, max_tb)
    B_pad = _round_up(B, TB)
    if B_pad != B:
        x = jnp.pad(x, ((0, B_pad - B), (0, 0)))

    grid = (B_pad // TB,)

    x_bytes = jnp.dtype(x.dtype).itemsize
    flops = 2 * B_pad * (D_IN * H1 + H1 * H2 + H2 * D_OUT)
    transcendentals = B_pad * (H1P + H2P)            # one exp per sigmoid elem
    bytes_accessed = (w1p.size + w2p.size + w3p.size) * 2 \
        + B_pad * D_IN * x_bytes + B_pad * OUTP * 2

    out_padded = pl.pallas_call(
        mlp3_kernel,
        out_shape=jax.ShapeDtypeStruct((B_pad, OUTP), jnp.bfloat16),
        grid=grid,
        in_specs=[
            pl.BlockSpec((TB, D_IN), lambda i: (i, 0)),       # x tile, pipelined
            pl.BlockSpec((D_IN, H1P), lambda i: (0, 0)),      # weights: DMA'd once,
            pl.BlockSpec((H1P, H2P), lambda i: (0, 0)),       # VMEM-resident across
            pl.BlockSpec((H2P, OUTP), lambda i: (0, 0)),      # all grid steps
        ],
        out_specs=pl.BlockSpec((TB, OUTP), lambda i: (i, 0)),
        compiler_params=pltpu.CompilerParams(
            dimension_semantics=("parallel",),                # megacore on v7x
            # TB=1024 needs ~16-20 MiB (x 2x3.1 MiB, weights 2x0.85 MiB, f32
            # h1/h2/acc temporaries); v5e's scoped default is only 16 MiB, so
            # raise explicitly.  48 MiB leaves headroom and stays under v7x's
            # 64 MiB physical VMEM.
            vmem_limit_bytes=48 * 1024 * 1024),
        cost_estimate=pl.CostEstimate(
            flops=flops,
            transcendentals=transcendentals,
            bytes_accessed=bytes_accessed),
    )(x, w1p, w2p, w3p)

    # Tiny [B, 10] slice; casting it back to f32 here is negligible.
    return out_padded[:B, :D_OUT].astype(jnp.float32)


def reference_forward_bf16(x, w1, w2, w3):
    """Pure-JAX reference mirroring the kernel's bf16-operand / f32-accumulate
    numerics and the final bf16 logits store (validates the kernel itself)."""
    bf = jnp.bfloat16
    xb = x.astype(bf)
    h1 = jax.nn.sigmoid(jnp.dot(xb, w1.T.astype(bf),
                                preferred_element_type=jnp.float32))
    h2 = jax.nn.sigmoid(jnp.dot(h1.astype(bf), w2.T.astype(bf),
                                preferred_element_type=jnp.float32))
    out = jnp.dot(h2.astype(bf), w3.T.astype(bf),
                  preferred_element_type=jnp.float32)
    return out.astype(bf).astype(jnp.float32)


if __name__ == "__main__":
    key = jax.random.PRNGKey(0)
    kx, k1, k2, k3 = jax.random.split(key, 4)

    B = 8
    x = jax.random.normal(kx, (B, D_IN), dtype=jnp.float32)

    # Deterministic init mirroring NN3layer.initialize(): standard-normal
    # weights, PyTorch layout [out_features, in_features].
    w1 = jax.random.normal(k1, (H1, D_IN), dtype=jnp.float32)   # fc1.weight
    w2 = jax.random.normal(k2, (H2, H1), dtype=jnp.float32)     # fc2.weight
    w3 = jax.random.normal(k3, (D_OUT, H2), dtype=jnp.float32)  # fc3.weight

    # One-time weight prep (amortized across calls; no per-call transposes).
    w1p, w2p, w3p = prepare_weights(w1, w2, w3)

    # f32-x path.
    out = nn3layer_forward(x, w1p, w2p, w3p)
    out = jax.block_until_ready(out)
    assert out.shape == (B, D_OUT)

    # Validate against a reference with identical bf16-operand numerics.
    # (bf16 weights/logits + approx-reciprocal sigmoid are intentional
    #  accuracy/throughput trade-offs; tolerance covers them.)
    ref = reference_forward_bf16(x, w1, w2, w3)
    assert jnp.allclose(out, ref, rtol=2e-2, atol=1e-1), "mismatch vs reference"

    # bf16-x path (halves the dominant HBM read when the pipeline supplies bf16).
    out_bf = nn3layer_forward(x.astype(jnp.bfloat16), w1p, w2p, w3p)
    out_bf = jax.block_until_ready(out_bf)
    assert out_bf.shape == (B, D_OUT)
    assert jnp.allclose(out_bf, ref, rtol=2e-2, atol=1e-1), "bf16-x mismatch"

    print("KERNEL_OK")
</pallas_src>

<mosaic_0001>
module attributes {stable_mosaic.version = 11 : i64} {
  func.func @mlp3_kernel(%arg0: i32, %arg1: memref<8x784xf32, #tpu.memory_space<vmem>>, %arg2: memref<784x384xbf16, #tpu.memory_space<vmem>>, %arg3: memref<384x256xbf16, #tpu.memory_space<vmem>>, %arg4: memref<256x128xbf16, #tpu.memory_space<vmem>>, %arg5: memref<8x128xbf16, #tpu.memory_space<vmem>>) attributes {dimension_semantics = [#tpu.dimension_semantics<parallel>], iteration_bounds = array<i64: 1>, scalar_prefetch = 0 : i64, scratch_operands = 0 : i64, tpu.core_type = #tpu.core_type<tc>, window_params = [{transform_indices = @transform_0, window_bounds = array<i64: 8, 784>}, {pipeline_mode = #tpu.pipeline_mode<synchronous>, transform_indices = @transform_1, window_bounds = array<i64: 784, 384>}, {pipeline_mode = #tpu.pipeline_mode<synchronous>, transform_indices = @transform_2, window_bounds = array<i64: 384, 256>}, {pipeline_mode = #tpu.pipeline_mode<synchronous>, transform_indices = @transform_3, window_bounds = array<i64: 256, 128>}, {transform_indices = @transform_4, window_bounds = array<i64: 8, 128>}]} {
    %c0 = arith.constant 0 : index
    %c0_0 = arith.constant 0 : index
    %0 = vector.load %arg1[%c0, %c0_0] : memref<8x784xf32, #tpu.memory_space<vmem>>, vector<8x784xf32>
    %1 = arith.truncf %0 : vector<8x784xf32> to vector<8x784xbf16>
    %c0_1 = arith.constant 0 : index
    %c0_2 = arith.constant 0 : index
    %2 = vector.load %arg2[%c0_1, %c0_2] : memref<784x384xbf16, #tpu.memory_space<vmem>>, vector<784x384xbf16>
    %cst = arith.constant dense<0.000000e+00> : vector<8x384xf32>
    %3 = tpu.matmul %1, %2, %cst {dimension_numbers = #tpu.dot_dimension_numbers<[1], [0], [0], [1], [0, 0, 1, 1], [], []>} : vector<8x784xbf16>, vector<784x384xbf16>, vector<8x384xf32> -> vector<8x384xf32>
    %cst_3 = arith.constant 0.000000e+00 : f32
    %4 = vector.broadcast %cst_3 : f32 to vector<8x384xf32>
    %5 = arith.subf %4, %3 : vector<8x384xf32>
    %6 = math.exp %5 : vector<8x384xf32>
    %cst_4 = arith.constant 1.000000e+00 : f32
    %7 = vector.broadcast %cst_4 : f32 to vector<8x384xf32>
    %8 = arith.addf %7, %6 : vector<8x384xf32>
    %9 = tpu.reciprocal %8 {approx = true} : vector<8x384xf32> -> vector<8x384xf32>
    %10 = arith.truncf %9 : vector<8x384xf32> to vector<8x384xbf16>
    %c0_5 = arith.constant 0 : index
    %c0_6 = arith.constant 0 : index
    %11 = vector.load %arg3[%c0_5, %c0_6] : memref<384x256xbf16, #tpu.memory_space<vmem>>, vector<384x256xbf16>
    %cst_7 = arith.constant dense<0.000000e+00> : vector<8x256xf32>
    %12 = tpu.matmul %10, %11, %cst_7 {dimension_numbers = #tpu.dot_dimension_numbers<[1], [0], [0], [1], [0, 0, 1, 1], [], []>} : vector<8x384xbf16>, vector<384x256xbf16>, vector<8x256xf32> -> vector<8x256xf32>
    %cst_8 = arith.constant 0.000000e+00 : f32
    %13 = vector.broadcast %cst_8 : f32 to vector<8x256xf32>
    %14 = arith.subf %13, %12 : vector<8x256xf32>
    %15 = math.exp %14 : vector<8x256xf32>
    %cst_9 = arith.constant 1.000000e+00 : f32
    %16 = vector.broadcast %cst_9 : f32 to vector<8x256xf32>
    %17 = arith.addf %16, %15 : vector<8x256xf32>
    %18 = tpu.reciprocal %17 {approx = true} : vector<8x256xf32> -> vector<8x256xf32>
    %19 = arith.truncf %18 : vector<8x256xf32> to vector<8x256xbf16>
    %c0_10 = arith.constant 0 : index
    %c0_11 = arith.constant 0 : index
    %20 = vector.load %arg4[%c0_10, %c0_11] : memref<256x128xbf16, #tpu.memory_space<vmem>>, vector<256x128xbf16>
    %cst_12 = arith.constant dense<0.000000e+00> : vector<8x128xf32>
    %21 = tpu.matmul %19, %20, %cst_12 {dimension_numbers = #tpu.dot_dimension_numbers<[1], [0], [0], [1], [0, 0, 1, 1], [], []>} : vector<8x256xbf16>, vector<256x128xbf16>, vector<8x128xf32> -> vector<8x128xf32>
    %22 = arith.truncf %21 : vector<8x128xf32> to vector<8x128xbf16>
    %c0_13 = arith.constant 0 : index
    %c0_14 = arith.constant 0 : index
    %23 = vector.load %arg5[%c0_13, %c0_14] : memref<8x128xbf16, #tpu.memory_space<vmem>>, vector<8x128xbf16>
    tpu.vector_store %arg5[%c0_13, %c0_14], %22 {strides = array<i32>} : memref<8x128xbf16, #tpu.memory_space<vmem>>, vector<8x128xbf16>,
    return
  }
  func.func @transform_0(%arg0: i32) -> (i32, i32) {
    %c0_i32 = arith.constant 0 : i32
    %c0_i32_0 = arith.constant 0 : i32
    return %arg0, %c0_i32 : i32, i32
  }
  func.func @transform_1(%arg0: i32) -> (i32, i32) {
    %c0_i32 = arith.constant 0 : i32
    %c0_i32_0 = arith.constant 0 : i32
    %c0_i32_1 = arith.constant 0 : i32
    return %c0_i32, %c0_i32_0 : i32, i32
  }
  func.func @transform_2(%arg0: i32) -> (i32, i32) {
    %c0_i32 = arith.constant 0 : i32
    %c0_i32_0 = arith.constant 0 : i32
    %c0_i32_1 = arith.constant 0 : i32
    return %c0_i32, %c0_i32_0 : i32, i32
  }
  func.func @transform_3(%arg0: i32) -> (i32, i32) {
    %c0_i32 = arith.constant 0 : i32
    %c0_i32_0 = arith.constant 0 : i32
    %c0_i32_1 = arith.constant 0 : i32
    return %c0_i32, %c0_i32_0 : i32, i32
  }
  func.func @transform_4(%arg0: i32) -> (i32, i32) {
    %c0_i32 = arith.constant 0 : i32
    %c0_i32_0 = arith.constant 0 : i32
    return %arg0, %c0_i32 : i32, i32
  }
}

</mosaic_0001>

<bundles_post_ra>
// kernel: tpu_custom_call.1
= control target key start
LH: loop header
LB: loop body
LE: loop exit
PB: predicated region body
PF: predicated region fallthrough
CT: control target
= control target key end

     0   :  { %9 = vsyncpa [#allocation3], 0  ;;  %s2861_s0 = inlined_call_operand.hbm [shape: f32[8,784], index: 0, kind: input, shape index: {}]   ;;  %s2862_s1 = inlined_call_operand.hbm [shape: bf16[784,384], index: 1, kind: input, shape index: {}]   ;;  %s2863_s2 = inlined_call_operand.hbm [shape: bf16[384,256], index: 2, kind: input, shape index: {}]   ;;  %s2864_s3 = inlined_call_operand.hbm [shape: bf16[256,128], index: 3, kind: input, shape index: {}]   ;;  %s2865_s4 = inlined_call_operand.hbm [shape: bf16[8,128], index: 4, kind: output, shape index: {}]  }
   0x1   :  { %10 = vsyncpa [#allocation6], 0 }
   0x2   :  { %11 = vsyncpa [#allocation9], 0 }
   0x3   :  { %12 = vsyncpa [#allocation4], 0  ;;  %s2740_s15 = smov [#allocation5]   ;;  %s2622_s19 = scalar_lea.hbm %s2862_s1, 18816 }
   0x4   :  { %s28_s16 = sshll.u32 %s2740_s15, 4  ;;  %p2623_p0 = scmp.ne.s32.totalorder %s2862_s1, %s2622_s19  ;;  %s29_s16 = int_to_ptr.vmem [resolvable:$true] %s28_s16 }
   0x5   :  { %p2626_p1 = scmp.lt.u32.totalorder %s2622_s19, %s2862_s1 }
   0x7   :  { %p2628_p2 = pnand %p2626_p1, %p2623_p0 }
   0x9   :  { %2631 = shalt.err (!%p2628_p2)
}
   0xa   :  { %s2632_s24 = scalar_lea.vmem %s29_s16, 18816  ;;  %p2637_p4 = scmp.lt.s32.totalorder %s29_s16, %s29_s16 }
   0xb   :  { %p2633_p3 = scmp.ne.s32.totalorder %s29_s16, %s2632_s24  ;;  %p2638_p5 = scmp.lt.s32.totalorder %s2632_s24, %s2632_s24 }
   0xd   :  { %p2639_p6 = por %p2638_p5, %p2637_p4 }
   0xf   :  { %p2640_p7 = pnand %p2639_p6, %p2633_p3 }
  0x11   :  { %2643 = shalt.err (!%p2640_p7)
}
  0x12   :  { %s2741_s25 = smov 192   ;;  %s2742_s26 = smov 12  }
  0x13   :  { %34 = dma.hbm_to_vmem [thread:$0]  %s2862_s1, 18816, %s29_s16, [#allocation6], %s2741_s25, %s2741_s25, %s2742_s26  }
  0x14   :  { %s2743_s29 = smov [#allocation2]   ;;  %s2744_s5 = smov [#allocation7]  }
  0x15   :  { %s19_s30 = sshll.u32 %s2743_s29, 4  ;;  %s40_s6 = sshll.u32 %s2744_s5, 4  ;;  %s20_s30 = int_to_ptr.vmem [resolvable:$true] %s19_s30  ;;  %s41_s6 = int_to_ptr.vmem [resolvable:$true] %s40_s6 }
  0x16   :  { %s2644_s9 = scalar_lea.hbm %s2861_s0, 896 }
  0x17   :  { %p2645_p8 = scmp.ne.s32.totalorder %s2861_s0, %s2644_s9  ;;  %p2648_p9 = scmp.lt.u32.totalorder %s2644_s9, %s2861_s0 }
  0x19   :  { %p2650_p10 = pnand %p2648_p9, %p2645_p8 }
  0x1b   :  { %2653 = shalt.err (!%p2650_p10)
}
  0x1c   :  { %s2654_s1 = scalar_lea.vmem %s20_s30, 896  ;;  %p2659_p12 = scmp.lt.s32.totalorder %s20_s30, %s20_s30 }
  0x1d   :  { %p2655_p11 = scmp.ne.s32.totalorder %s20_s30, %s2654_s1  ;;  %p2660_p13 = scmp.lt.s32.totalorder %s2654_s1, %s2654_s1 }
  0x1f   :  { %p2661_p0 = por %p2660_p13, %p2659_p12 }
  0x21   :  { %p2662_p1 = pnand %p2661_p0, %p2655_p11 }
  0x23   :  { %2665 = shalt.err (!%p2662_p1)
}
  0x24   :  { %22 = dma.hbm_to_vmem [thread:$0]  %s2861_s0, 896, %s20_s30, [#allocation3]  }
  0x25   :  { %s2666_s18 = scalar_lea.hbm %s2863_s2, 6144 }
  0x26   :  { %p2667_p2 = scmp.ne.s32.totalorder %s2863_s2, %s2666_s18  ;;  %p2670_p3 = scmp.lt.u32.totalorder %s2666_s18, %s2863_s2 }
  0x28   :  { %p2672_p4 = pnand %p2670_p3, %p2667_p2 }
  0x2a   :  { %2675 = shalt.err (!%p2672_p4)
}
  0x2b   :  { %s2676_s23 = scalar_lea.vmem %s41_s6, 6144  ;;  %p2681_p6 = scmp.lt.s32.totalorder %s41_s6, %s41_s6 }
  0x2c   :  { %p2677_p5 = scmp.ne.s32.totalorder %s41_s6, %s2676_s23  ;;  %p2682_p7 = scmp.lt.s32.totalorder %s2676_s23, %s2676_s23 }
  0x2e   :  { %p2683_p8 = por %p2682_p7, %p2681_p6 }
  0x30   :  { %p2684_p9 = pnand %p2683_p8, %p2677_p5 }
  0x32   :  { %2687 = shalt.err (!%p2684_p9)
}
  0x33   :  { %s2745_s0 = smov 128   ;;  %s2746_s24 = smov 8  }
  0x34   :  { %46 = dma.hbm_to_vmem [thread:$0]  %s2863_s2, 6144, %s41_s6, [#allocation6], %s2745_s0, %s2745_s0, %s2746_s24  }
  0x35   :  { %s2747_s27 = smov [#allocation8]   ;;  %s2688_s5 = scalar_lea.hbm %s2864_s3, 2048 }
  0x36   :  { %s52_s28 = sshll.u32 %s2747_s27, 4  ;;  %p2689_p10 = scmp.ne.s32.totalorder %s2864_s3, %s2688_s5  ;;  %s53_s28 = int_to_ptr.vmem [resolvable:$true] %s52_s28 }
  0x37   :  { %p2692_p11 = scmp.lt.u32.totalorder %s2688_s5, %s2864_s3 }
  0x39   :  { %p2694_p12 = pnand %p2692_p11, %p2689_p10 }
  0x3b   :  { %2697 = shalt.err (!%p2694_p12)
}
  0x3c   :  { %s2698_s11 = scalar_lea.vmem %s53_s28, 2048  ;;  %p2703_p0 = scmp.lt.s32.totalorder %s53_s28, %s53_s28 }
  0x3d   :  { %p2699_p13 = scmp.ne.s32.totalorder %s53_s28, %s2698_s11  ;;  %p2704_p1 = scmp.lt.s32.totalorder %s2698_s11, %s2698_s11 }
  0x3f   :  { %p2705_p2 = por %p2704_p1, %p2703_p0 }
  0x41   :  { %p2706_p3 = pnand %p2705_p2, %p2699_p13 }
  0x43   :  { %2709 = shalt.err (!%p2706_p3)
}
  0x44   :  { %s2748_s2 = smov 64   ;;  %s2749_s6 = smov 4  }
  0x45   :  { %58 = dma.hbm_to_vmem [thread:$0]  %s2864_s3, 2048, %s53_s28, [#allocation9], %s2748_s2, %s2748_s2, %s2749_s6  }
  0x46   :  { %2732 = dma.done.wait [#allocation3], 896  }
  0x47   :  { %2733 = vsyncadd [#allocation3], 4294966400 }
  0x48   :  { %2734 = dma.done.wait [#allocation6], 24960  }
  0x49   :  { %2735 = vsyncadd [#allocation6], 4294942336 }
  0x4a   :  { %2736 = dma.done.wait [#allocation9], 2048  }
  0x4b   :  { %2737 = vsyncadd [#allocation9], 4294965248  ;;  %v2750_v0 = vmov 0   ;;  %v2318_v1 = vld [vmem:[#allocation5 + $0x4] ss:$12 sps:$4 sm:$0xff]   ;;  %v78_v18 = vld [vmem:[#allocation2 + $0x30] sm:$0xff] }
  0x4c   :  { %1225 = vmatprep.mubr.bf16.mxu1 %v2750_v0  ;;  %v2320_v2 = vld [vmem:[#allocation5] ss:$12 sps:$4 sm:$0xff]   ;;  %1070 = vmatprep.subr.bf16.mxu0 %v2318_v1  ;;  %v2321_v3 = vld [vmem:[#allocation5 + $0x1c] ss:$12 sps:$4 sm:$0xff]   ;;  %v2323_v4 = vld [vmem:[#allocation5 + $0x18] ss:$12 sps:$4 sm:$0xff]   ;;  %v2828_v20 = vpack.c.bf16 %v78_v18, %v78_v18 }
  0x4d   :  { %1071 = vmatpush1.bf16.msra.mxu0 %v2320_v2  ;;  %v2324_v5 = vld [vmem:[#allocation5 + $0x34] ss:$12 sps:$4 sm:$0xff]   ;;  %v2326_v6 = vld [vmem:[#allocation5 + $0x30] ss:$12 sps:$4 sm:$0xff]   ;;  %v2327_v7 = vld [vmem:[#allocation5 + $0x4c] ss:$12 sps:$4 sm:$0xff]  }
  0x4e   :  { %1072 = vmatprep.subr.bf16.mxu0 %v2321_v3  ;;  %v2329_v8 = vld [vmem:[#allocation5 + $0x48] ss:$12 sps:$4 sm:$0xff]   ;;  %v2330_v9 = vld [vmem:[#allocation5 + $0x64] ss:$12 sps:$4 sm:$0xff]   ;;  %v2332_v10 = vld [vmem:[#allocation5 + $0x60] ss:$12 sps:$4 sm:$0xff]  }
  0x4f   :  { %v2333_v11 = vld [vmem:[#allocation5 + $0x7c] ss:$12 sps:$4 sm:$0xff]   ;;  %v2357_v12 = vld [vmem:[#allocation5 + $0x484] ss:$12 sps:$4 sm:$0xff]   ;;  %v2336_v14 = vld [vmem:[#allocation5 + $0x94] ss:$12 sps:$4 sm:$0xff]  }
  0x50   :  { %v2335_v13 = vld [vmem:[#allocation5 + $0x78] ss:$12 sps:$4 sm:$0xff]   ;;  %v2361_v15 = vld [vmem:[#allocation5 + $0x480] ss:$12 sps:$4 sm:$0xff]   ;;  %1193 = vmatprep.subr.bf16.mxu1 %v2357_v12  ;;  %v2363_v16 = vld [vmem:[#allocation5 + $0xc8] ss:$12 sps:$4 sm:$0xff]  }
  0x51   :  { %1073 = vmatpush1.bf16.msra.mxu0 %v2323_v4  ;;  %v2338_v17 = vld [vmem:[#allocation5 + $0x90] ss:$12 sps:$4 sm:$0xff]   ;;  %1194 = vmatpush1.bf16.msra.mxu1 %v2361_v15  ;;  %vm1066_vm0 = vcmask 130048   ;;  %v2339_v19 = vld [vmem:[#allocation5 + $0xac] ss:$12 sps:$4 sm:$0xff]   ;;  %vm2752_vm1 = vmmov 0  }
  0x52   :  { %1074 = vmatprep.subr.bf16.mxu0 %v2324_v5  ;;  %2194 = vmatprep.subr.bf16.mxu1 %v2363_v16  ;;  %v2366_v21 = vld [vmem:[#allocation5 + $0x8] ss:$12 sps:$4 sm:$0xff]   ;;  %v2368_v22 = vld [vmem:[#allocation5 + $0xe0] ss:$12 sps:$4 sm:$0xff]   ;;  %v2342_v24 = vld [vmem:[#allocation5 + $0xc4] ss:$12 sps:$4 sm:$0xff]  }
  0x53   :  { %v2341_v23 = vld [vmem:[#allocation5 + $0xa8] ss:$12 sps:$4 sm:$0xff]   ;;  %v2371_v25 = vld [vmem:[#allocation5 + $0x20] ss:$12 sps:$4 sm:$0xff]   ;;  %v2373_v26 = vld [vmem:[#allocation5 + $0xf8] ss:$12 sps:$4 sm:$0xff]  }
  0x54   :  { %2128 = vmatmul.mubr.msk.bf16.vlgmr.msra.gmra.mrb[0].mxu1 %vm1066_vm0, %v2828_v20  ;;  %v73_v27 = vld [vmem:[#allocation2 + $0x8] sm:$0xff]  ;;  %v2344_v29 = vld [vmem:[#allocation5 + $0xc0] ss:$12 sps:$4 sm:$0xff]   ;;  %v2377_v30 = vld [vmem:[#allocation5 + $0x38] ss:$12 sps:$4 sm:$0xff]   ;;  %s2753_s3 = smov [#allocation10]  }
  0x55   :  { %1075 = vmatpush1.bf16.msra.mxu0 %v2326_v6  ;;  %2195 = vmatpush3.bf16.msra.mxu1 %v2366_v21  ;;  %v80_v28 = vpack.c.bf16 %v73_v27, %v73_v27  ;;  %v2378_v31 = vld [vmem:[#allocation5 + $0x110] ss:$12 sps:$4 sm:$0xff]   ;;  %v2347_v33 = vld [vmem:[#allocation5 + $0xd8] ss:$12 sps:$4 sm:$0xff]   ;;  %v2383_v35 = vld [vmem:[#allocation5 + $0x128] ss:$12 sps:$4 sm:$0xff]  }
  0x56   :  { %1076 = vmatprep.subr.bf16.mxu0 %v2327_v7  ;;  %2196 = vmatprep.subr.bf16.mxu1 %v2368_v22  ;;  %v2345_v32 = vld [vmem:[#allocation5 + $0xdc] ss:$12 sps:$4 sm:$0xff]   ;;  %v2348_v36 = vld [vmem:[#allocation5 + $0xf4] ss:$12 sps:$4 sm:$0xff]   ;;  %v2351_v40 = vld [vmem:[#allocation5 + $0x10c] ss:$12 sps:$4 sm:$0xff]  }
  0x57   :  { %1102 = vmatprep.mubr.bf16.mxu0 %v80_v28  ;;  %1266 = vmatprep.mubr.bf16.mxu1 %v80_v28  ;;  %v2382_v34 = vld [vmem:[#allocation5 + $0x50] ss:$12 sps:$4 sm:$0xff]   ;;  %v2387_v37 = vld [vmem:[#allocation5 + $0x68] ss:$12 sps:$4 sm:$0xff]   ;;  %v2388_v39 = vld [vmem:[#allocation5 + $0x140] ss:$12 sps:$4 sm:$0xff]  }
  0x58   :  { %v2350_v38 = vld [vmem:[#allocation5 + $0xf0] ss:$12 sps:$4 sm:$0xff]   ;;  %v2353_v41 = vld [vmem:[#allocation5 + $0x108] ss:$12 sps:$4 sm:$0xff]   ;;  %v2392_v42 = vld [vmem:[#allocation5 + $0x80] ss:$12 sps:$4 sm:$0xff]  }
  0x59   :  { %1077 = vmatpush1.bf16.msra.mxu0 %v2329_v8  ;;  %2197 = vmatpush3.bf16.msra.mxu1 %v2371_v25  ;;  %v2393_v43 = vld [vmem:[#allocation5 + $0x158] ss:$12 sps:$4 sm:$0xff]   ;;  %v2356_v45 = vld [vmem:[#allocation5 + $0x120] ss:$12 sps:$4 sm:$0xff]   ;;  %v2398_v47 = vld [vmem:[#allocation5 + $0x170] ss:$12 sps:$4 sm:$0xff]  }
  0x5a   :  { %1078 = vmatprep.subr.bf16.mxu0 %v2330_v9  ;;  %2198 = vmatprep.subr.bf16.mxu1 %v2373_v26  ;;  %v2354_v44 = vld [vmem:[#allocation5 + $0x124] ss:$12 sps:$4 sm:$0xff]   ;;  %v2359_v48 = vld [vmem:[#allocation5 + $0x13c] ss:$12 sps:$4 sm:$0xff]   ;;  %v2364_v50 = vld [vmem:[#allocation5 + $0x154] ss:$12 sps:$4 sm:$0xff]  }
  0x5b   :  { %v2397_v46 = vld [vmem:[#allocation5 + $0x98] ss:$12 sps:$4 sm:$0xff]   ;;  %v2402_v51 = vld [vmem:[#allocation5 + $0xb0] ss:$12 sps:$4 sm:$0xff]   ;;  %v2403_v52 = vld [vmem:[#allocation5 + $0x248] ss:$12 sps:$4 sm:$0xff]  }
  0x5c   :  { %v2362_v49 = vld [vmem:[#allocation5 + $0x138] ss:$12 sps:$4 sm:$0xff]   ;;  %v72_v53 = vld [vmem:[#allocation2] sm:$0xff]  ;;  %v2367_v54 = vld [vmem:[#allocation5 + $0x150] ss:$12 sps:$4 sm:$0xff]   ;;  %s1970_s1 = sshll.u32 %s2753_s3, 4  ;;  %s1971_s1 = int_to_ptr.vmem [resolvable:$true] %s1970_s1 }
  0x5d   :  { %1079 = vmatpush1.bf16.msra.mxu0 %v2332_v10  ;;  %2199 = vmatpush3.bf16.msra.mxu1 %v2377_v30  ;;  %v2407_v55 = vld [vmem:[#allocation5 + $0x188] ss:$12 sps:$4 sm:$0xff]   ;;  %v79_v56 = vpack.c.bf16 %v72_v53, %v72_v53  ;;  %v2408_v57 = vld [vmem:[#allocation5 + $0x260] ss:$12 sps:$4 sm:$0xff]   ;;  %v2413_v61 = vld [vmem:[#allocation5 + $0x278] ss:$12 sps:$4 sm:$0xff]   ;;  %p2715_p5 = scmp.lt.s32.totalorder %s1971_s1, %s1971_s1 }
  0x5e   :  { %1080 = vmatprep.subr.bf16.mxu0 %v2333_v11  ;;  %2200 = vmatprep.subr.bf16.mxu1 %v2378_v31  ;;  %v2369_v58 = vld [vmem:[#allocation5 + $0x16c] ss:$12 sps:$4 sm:$0xff]   ;;  %v2372_v60 = vld [vmem:[#allocation5 + $0x168] ss:$12 sps:$4 sm:$0xff]   ;;  %v2376_v62 = vld [vmem:[#allocation5 + $0x184] ss:$12 sps:$4 sm:$0xff]  }
  0x5f   :  { %v2412_v59 = vld [vmem:[#allocation5 + $0x1a0] ss:$12 sps:$4 sm:$0xff]   ;;  %v2417_v1 = vld [vmem:[#allocation5 + $0x1b8] ss:$12 sps:$4 sm:$0xff]   ;;  %v2418_v2 = vld [vmem:[#allocation5 + $0x290] ss:$12 sps:$4 sm:$0xff]  }
  0x60   :  { %v2374_v63 = vld [vmem:[#allocation5 + $0x180] ss:$12 sps:$4 sm:$0xff]   ;;  %v2381_v3 = vld [vmem:[#allocation5 + $0x19c] ss:$12 sps:$4 sm:$0xff]   ;;  %v2379_v4 = vld [vmem:[#allocation5 + $0x198] ss:$12 sps:$4 sm:$0xff]  }
  0x61   :  { %1081 = vmatpush1.bf16.msra.mxu0 %v2335_v13  ;;  %2201 = vmatpush3.bf16.msra.mxu1 %v2382_v34  ;;  %v2422_v5 = vld [vmem:[#allocation5 + $0x1d0] ss:$12 sps:$4 sm:$0xff]   ;;  %v2423_v6 = vld [vmem:[#allocation5 + $0x2a8] ss:$12 sps:$4 sm:$0xff]   ;;  %v2428_v10 = vld [vmem:[#allocation5 + $0x2c0] ss:$12 sps:$4 sm:$0xff]  }
  0x62   :  { %1082 = vmatprep.subr.bf16.mxu0 %v2336_v14  ;;  %2202 = vmatprep.subr.bf16.mxu1 %v2383_v35  ;;  %v2386_v7 = vld [vmem:[#allocation5 + $0x1b4] ss:$12 sps:$4 sm:$0xff]   ;;  %v2384_v8 = vld [vmem:[#allocation5 + $0x1b0] ss:$12 sps:$4 sm:$0xff]   ;;  %v2391_v11 = vld [vmem:[#allocation5 + $0x1cc] ss:$12 sps:$4 sm:$0xff]  }
  0x63   :  { %v2427_v9 = vld [vmem:[#allocation5 + $0x1e8] ss:$12 sps:$4 sm:$0xff]   ;;  %v2432_v13 = vld [vmem:[#allocation5 + $0x200] ss:$12 sps:$4 sm:$0xff]   ;;  %v2433_v15 = vld [vmem:[#allocation5 + $0x2d8] ss:$12 sps:$4 sm:$0xff]  }
  0x64   :  { %v2389_v12 = vld [vmem:[#allocation5 + $0x1c8] ss:$12 sps:$4 sm:$0xff]   ;;  %v75_v14 = vld [vmem:[#allocation2 + $0x18] sm:$0xff]  ;;  %v2438_v21 = vld [vmem:[#allocation5 + $0x2f0] ss:$12 sps:$4 sm:$0xff]   ;;  %s2710_s14 = scalar_lea.vmem %s1971_s1, 64 }
  0x65   :  { %1083 = vmatpush1.bf16.msra.mxu0 %v2338_v17  ;;  %2203 = vmatpush3.bf16.msra.mxu1 %v2387_v37  ;;  %v82_v16 = vpack.c.bf16 %v75_v14, %v75_v14  ;;  %v2396_v17 = vld [vmem:[#allocation5 + $0x1e4] ss:$12 sps:$4 sm:$0xff]   ;;  %v2394_v18 = vld [vmem:[#allocation5 + $0x1e0] ss:$12 sps:$4 sm:$0xff]   ;;  %v2401_v22 = vld [vmem:[#allocation5 + $0x1fc] ss:$12 sps:$4 sm:$0xff]   ;;  %p2711_p4 = scmp.ne.s32.totalorder %s1971_s1, %s2710_s14  ;;  %p2716_p6 = scmp.lt.s32.totalorder %s2710_s14, %s2710_s14 }
  0x66   :  { %1084 = vmatprep.subr.bf16.mxu0 %v2339_v19  ;;  %2204 = vmatprep.subr.bf16.mxu1 %v2388_v39  ;;  %v2437_v19 = vld [vmem:[#allocation5 + $0x218] ss:$12 sps:$4 sm:$0xff]   ;;  %v2443_v26 = vld [vmem:[#allocation5 + $0x3c8] ss:$12 sps:$4 sm:$0xff]   ;;  %v2404_v28 = vld [vmem:[#allocation5 + $0x210] ss:$12 sps:$4 sm:$0xff]  }
  0x67   :  { %v2399_v25 = vld [vmem:[#allocation5 + $0x1f8] ss:$12 sps:$4 sm:$0xff]   ;;  %v2406_v27 = vld [vmem:[#allocation5 + $0x214] ss:$12 sps:$4 sm:$0xff]   ;;  %v2458_v39 = vld [vmem:[#allocation5 + $0x410] ss:$12 sps:$4 sm:$0xff]   ;;  %p2717_p7 = por %p2716_p6, %p2715_p5 }
  0x68   :  { %v2447_v30 = vld [vmem:[#allocation5 + $0x308] ss:$12 sps:$4 sm:$0xff]   ;;  %v2448_v31 = vld [vmem:[#allocation5 + $0x3e0] ss:$12 sps:$4 sm:$0xff]   ;;  %v2453_v35 = vld [vmem:[#allocation5 + $0x3f8] ss:$12 sps:$4 sm:$0xff]  }
  0x69   :  { %1085 = vmatpush1.bf16.msra.mxu0 %v2341_v23  ;;  %2205 = vmatpush3.bf16.msra.mxu1 %v2392_v42  ;;  %v2442_v23 = vld [vmem:[#allocation5 + $0x230] ss:$12 sps:$4 sm:$0xff]   ;;  %v2452_v34 = vld [vmem:[#allocation5 + $0x320] ss:$12 sps:$4 sm:$0xff]   ;;  %v2473_v53 = vld [vmem:[#allocation5 + $0x458] ss:$12 sps:$4 sm:$0xff]   ;;  %p2718_p8 = pnand %p2717_p7, %p2711_p4 }
  0x6a   :  { %1086 = vmatprep.subr.bf16.mxu0 %v2342_v24  ;;  %2206 = vmatprep.subr.bf16.mxu1 %v2393_v43  ;;  %v74_v24 = vld [vmem:[#allocation2 + $0x10] sm:$0xff]  ;;  %v2414_v37 = vld [vmem:[#allocation5 + $0x240] ss:$12 sps:$4 sm:$0xff]   ;;  %v2463_v43 = vld [vmem:[#allocation5 + $0x428] ss:$12 sps:$4 sm:$0xff]  }
  0x6b   :  { %v2462_v42 = vld [vmem:[#allocation5 + $0x350] ss:$12 sps:$4 sm:$0xff]  }
  0x6c   :  { %v2476_v14 = vld [vmem:[#allocation5 + $0x364] ss:$12 sps:$4 sm:$0xff]  }
  0x6d   :  { %1087 = vmatpush1.bf16.msra.mxu0 %v2344_v29  ;;  %2207 = vmatpush3.bf16.msra.mxu1 %v2397_v46  ;;  %v2832_v29 = vpack.c.bf16 %v74_v24, %v74_v24  ;;  %v2467_v46 = vld [vmem:[#allocation5 + $0x368] ss:$12 sps:$4 sm:$0xff]  }
  0x6e   :  { %1088 = vmatprep.subr.bf16.mxu0 %v2345_v32  ;;  %2208 = vmatprep.subr.bf16.mxu1 %v2398_v47  ;;  %v2411_v32 = vld [vmem:[#allocation5 + $0x22c] ss:$12 sps:$4 sm:$0xff]   ;;  %v2495_v24 = vld [vmem:[#allocation5 + $0x3dc] ss:$12 sps:$4 sm:$0xff]  }
  0x71   :  { %1089 = vmatpush1.bf16.msra.mxu0 %v2347_v33  ;;  %2209 = vmatpush3.bf16.msra.mxu1 %v2402_v51  ;;  %v2409_v33 = vld [vmem:[#allocation5 + $0x228] ss:$12 sps:$4 sm:$0xff]  }
  0x72   :  { %1090 = vmatprep.subr.bf16.mxu0 %v2348_v36  ;;  %2216 = vmatprep.subr.bf16.mxu1 %v2403_v52  ;;  %v2416_v36 = vld [vmem:[#allocation5 + $0x244] ss:$12 sps:$4 sm:$0xff]   ;;  %v2429_v51 = vld [vmem:[#allocation5 + $0x288] ss:$12 sps:$4 sm:$0xff]   ;;  %v2472_v52 = vld [vmem:[#allocation5 + $0x380] ss:$12 sps:$4 sm:$0xff]  }
  0x74   :  { %1267 = vmatmul.mubr.bf16.vlgmr.msra.gmra.mrb[4].mxu1 %v79_v56 }
  0x75   :  { %1091 = vmatpush1.bf16.msra.mxu0 %v2350_v38  ;;  %2217 = vmatpush3.bf16.msra.mxu1 %v2407_v55  ;;  %v2457_v38 = vld [vmem:[#allocation5 + $0x338] ss:$12 sps:$4 sm:$0xff]   ;;  %v2434_v55 = vld [vmem:[#allocation5 + $0x2a0] ss:$12 sps:$4 sm:$0xff]  }
  0x76   :  { %1092 = vmatprep.subr.bf16.mxu0 %v2351_v40  ;;  %2218 = vmatprep.subr.bf16.mxu1 %v2408_v57  ;;  %v2421_v40 = vld [vmem:[#allocation5 + $0x25c] ss:$12 sps:$4 sm:$0xff]  }
  0x77   :  { %1306 = vmatprep.mubr.bf16.mxu1 %v82_v16  ;;  %v2478_v57 = vld [vmem:[#allocation5 + $0x470] ss:$12 sps:$4 sm:$0xff]  }
  0x79   :  { %1093 = vmatpush1.bf16.msra.mxu0 %v2353_v41  ;;  %2219 = vmatpush3.bf16.msra.mxu1 %v2412_v59  ;;  %v2419_v41 = vld [vmem:[#allocation5 + $0x258] ss:$12 sps:$4 sm:$0xff]   ;;  %v2482_v59 = vld [vmem:[#allocation5 + $0x3b0] ss:$12 sps:$4 sm:$0xff]  }
  0x7a   :  { %1094 = vmatprep.subr.bf16.mxu0 %v2354_v44  ;;  %2220 = vmatprep.subr.bf16.mxu1 %v2413_v61  ;;  %v2426_v44 = vld [vmem:[#allocation5 + $0x274] ss:$12 sps:$4 sm:$0xff]   ;;  %v2439_v61 = vld [vmem:[#allocation5 + $0x2b8] ss:$12 sps:$4 sm:$0xff]  }
  0x7d   :  { %1095 = vmatpush1.bf16.msra.mxu0 %v2356_v45  ;;  %2221 = vmatpush3.bf16.msra.mxu1 %v2417_v1  ;;  %v77_v45 = vld [vmem:[#allocation2 + $0x28] sm:$0xff] }
  0x7e   :  { %1096 = vmatprep.subr.bf16.mxu0 %v2359_v48  ;;  %2222 = vmatprep.subr.bf16.mxu1 %v2418_v2  ;;  %v84_v47 = vpack.c.bf16 %v77_v45, %v77_v45  ;;  %v2424_v48 = vld [vmem:[#allocation5 + $0x270] ss:$12 sps:$4 sm:$0xff]  }
  0x7f   :  { %v2444_v1 = vld [vmem:[#allocation5 + $0x2d0] ss:$12 sps:$4 sm:$0xff]  }
  0x81   :  { %1097 = vmatpush1.bf16.msra.mxu0 %v2362_v49  ;;  %2223 = vmatpush3.bf16.msra.mxu1 %v2422_v5  ;;  %v2468_v49 = vld [vmem:[#allocation5 + $0x440] ss:$12 sps:$4 sm:$0xff]   ;;  %v2449_v5 = vld [vmem:[#allocation5 + $0x2e8] ss:$12 sps:$4 sm:$0xff]  }
  0x82   :  { %1098 = vmatprep.subr.bf16.mxu0 %v2364_v50  ;;  %2224 = vmatprep.subr.bf16.mxu1 %v2423_v6  ;;  %v2431_v50 = vld [vmem:[#allocation5 + $0x28c] ss:$12 sps:$4 sm:$0xff]   ;;  %v2456_v6 = vld [vmem:[#allocation5 + $0x304] ss:$12 sps:$4 sm:$0xff]  }
  0x85   :  { %1099 = vmatpush1.bf16.msra.mxu0 %v2367_v54  ;;  %2225 = vmatpush3.bf16.msra.mxu1 %v2427_v9  ;;  %v2436_v54 = vld [vmem:[#allocation5 + $0x2a4] ss:$12 sps:$4 sm:$0xff]  }
  0x86   :  { %1100 = vmatprep.subr.bf16.mxu0 %v2369_v58  ;;  %2226 = vmatprep.subr.bf16.mxu1 %v2428_v10  ;;  %v2441_v58 = vld [vmem:[#allocation5 + $0x2bc] ss:$12 sps:$4 sm:$0xff]   ;;  %v2459_v9 = vld [vmem:[#allocation5 + $0x318] ss:$12 sps:$4 sm:$0xff]   ;;  %v2466_v10 = vld [vmem:[#allocation5 + $0x334] ss:$12 sps:$4 sm:$0xff]  }
  0x89   :  { %1101 = vmatpush1.bf16.msra.mxu0 %v2372_v60  ;;  %2227 = vmatpush3.bf16.msra.mxu1 %v2432_v13  ;;  %v76_v60 = vld [vmem:[#allocation2 + $0x20] sm:$0xff] }
  0x8a   :  { %1111 = vmatprep.subr.bf16.mxu0 %v2376_v62  ;;  %2228 = vmatprep.subr.bf16.mxu1 %v2433_v15  ;;  %v2446_v62 = vld [vmem:[#allocation5 + $0x2d4] ss:$12 sps:$4 sm:$0xff]   ;;  %v2835_v2 = vpack.c.bf16 %v76_v60, %v76_v60 }
  0x8b   :  { %v2469_v13 = vld [vmem:[#allocation5 + $0x348] ss:$12 sps:$4 sm:$0xff]   ;;  %v2474_v15 = vld [vmem:[#allocation5 + $0x360] ss:$12 sps:$4 sm:$0xff]  }
  0x8c   :  { %1103 = vmatmul.mubr.bf16.vlgmr.msra.gmra.mrb[0].mxu0 %v79_v56  ;;  %v2477_v56 = vld [vmem:[#allocation5 + $0x398] ss:$12 sps:$4 sm:$0xff]  }
  0x8d   :  { %1112 = vmatpush1.bf16.msra.mxu0 %v2374_v63  ;;  %1143 = vmatprep.mubr.bf16.mxu0 %v82_v16  ;;  %v2489_v63 = vld [vmem:[#allocation5 + $0x488] ss:$12 sps:$4 sm:$0xff]  }
  0x8e   :  { %1113 = vmatprep.subr.bf16.mxu0 %v2381_v3  ;;  %2229 = vmatpush3.bf16.msra.mxu1 %v2437_v19  ;;  %v2451_v3 = vld [vmem:[#allocation5 + $0x2ec] ss:$12 sps:$4 sm:$0xff]   ;;  %v2481_v16 = vld [vmem:[#allocation5 + $0x37c] ss:$12 sps:$4 sm:$0xff]  }
  0x8f   :  { %2230 = vmatprep.subr.bf16.mxu1 %v2438_v21  ;;  %v2488_v19 = vld [vmem:[#allocation5 + $0x3ac] ss:$12 sps:$4 sm:$0xff]   ;;  %v2486_v21 = vld [vmem:[#allocation5 + $0x3a8] ss:$12 sps:$4 sm:$0xff]  }
  0x91   :  { %1114 = vmatpush1.bf16.msra.mxu0 %v2379_v4  ;;  %v2751_v4 = vmov 0.0  }
  0x92   :  { %1115 = vmatprep.subr.bf16.mxu0 %v2386_v7  ;;  %2231 = vmatpush3.bf16.msra.mxu1 %v2442_v23  ;;  %v2454_v7 = vld [vmem:[#allocation5 + $0x300] ss:$12 sps:$4 sm:$0xff]  }
  0x93   :  { %2238 = vmatprep.subr.bf16.mxu1 %v2443_v26  ;;  %v2490_v23 = vld [vmem:[#allocation5 + $0x3c0] ss:$12 sps:$4 sm:$0xff]  }
  0x94   :  { %v2498_v26 = vld [vmem:[#allocation5 + $0x3f4] ss:$12 sps:$4 sm:$0xff]  }
  0x95   :  { %1116 = vmatpush1.bf16.msra.mxu0 %v2384_v8  ;;  %1307 = vmatmul.mubr.bf16.vlgmr.msra.gmra.mrb[8].mxu1 %v2832_v29  ;;  %v2461_v8 = vld [vmem:[#allocation5 + $0x31c] ss:$12 sps:$4 sm:$0xff]  }
  0x96   :  { %1117 = vmatprep.subr.bf16.mxu0 %v2391_v11  ;;  %2239 = vmatpush3.bf16.msra.mxu1 %v2447_v30  ;;  %v2464_v11 = vld [vmem:[#allocation5 + $0x330] ss:$12 sps:$4 sm:$0xff]  }
  0x97   :  { %2240 = vmatprep.subr.bf16.mxu1 %v2448_v31  ;;  %1346 = vmatprep.mubr.bf16.mxu1 %v84_v47  ;;  %v2504_v30 = vld [vmem:[#allocation5 + $0x424] ss:$12 sps:$4 sm:$0xff]   ;;  %v2502_v31 = vld [vmem:[#allocation5 + $0x420] ss:$12 sps:$4 sm:$0xff]  }
  0x99   :  { %1118 = vmatpush1.bf16.msra.mxu0 %v2389_v12  ;;  %v2471_v12 = vld [vmem:[#allocation5 + $0x34c] ss:$12 sps:$4 sm:$0xff]  }
  0x9a   :  { %1119 = vmatprep.subr.bf16.mxu0 %v2396_v17  ;;  %2241 = vmatpush3.bf16.msra.mxu1 %v2452_v34  ;;  %v2485_v17 = vld [vmem:[#allocation5 + $0x394] ss:$12 sps:$4 sm:$0xff]  }
  0x9b   :  { %2242 = vmatprep.subr.bf16.mxu1 %v2453_v35  ;;  %v2510_v34 = vld [vmem:[#allocation5 + $0x454] ss:$12 sps:$4 sm:$0xff]   ;;  %v2508_v35 = vld [vmem:[#allocation5 + $0x450] ss:$12 sps:$4 sm:$0xff]  }
  0x9d   :  { %1120 = vmatpush1.bf16.msra.mxu0 %v2394_v18  ;;  %v2483_v18 = vld [vmem:[#allocation5 + $0x390] ss:$12 sps:$4 sm:$0xff]  }
  0x9e   :  { %1121 = vmatprep.subr.bf16.mxu0 %v2401_v22  ;;  %2243 = vmatpush3.bf16.msra.mxu1 %v2457_v38  ;;  %v2492_v22 = vld [vmem:[#allocation5 + $0x3c4] ss:$12 sps:$4 sm:$0xff]   ;;  %v2514_v38 = vld [vmem:[#allocation7] ss:$8 sps:$4 sm:$0xff]  }
  0x9f   :  { %2244 = vmatprep.subr.bf16.mxu1 %v2458_v39  ;;  %v2516_v39 = vld [vmem:[#allocation7 + $0x4] ss:$8 sps:$4 sm:$0xff]  }
  0xa1   :  { %1122 = vmatpush1.bf16.msra.mxu0 %v2399_v25  ;;  %v2493_v25 = vld [vmem:[#allocation5 + $0x3d8] ss:$12 sps:$4 sm:$0xff]  }
  0xa2   :  { %1123 = vmatprep.subr.bf16.mxu0 %v2406_v27  ;;  %2245 = vmatpush3.bf16.msra.mxu1 %v2462_v42  ;;  %v2496_v27 = vld [vmem:[#allocation5 + $0x3f0] ss:$12 sps:$4 sm:$0xff]  }
  0xa3   :  { %2246 = vmatprep.subr.bf16.mxu1 %v2463_v43  ;;  %v2522_v43 = vld [vmem:[#allocation7 + $0x24] ss:$8 sps:$4 sm:$0xff]  }
  0xa5   :  { %1124 = vmatpush1.bf16.msra.mxu0 %v2404_v28  ;;  %v2501_v28 = vld [vmem:[#allocation5 + $0x40c] ss:$12 sps:$4 sm:$0xff]  }
  0xa6   :  { %1125 = vmatprep.subr.bf16.mxu0 %v2411_v32  ;;  %2247 = vmatpush3.bf16.msra.mxu1 %v2467_v46  ;;  %v2507_v32 = vld [vmem:[#allocation5 + $0x43c] ss:$12 sps:$4 sm:$0xff]  }
  0xa7   :  { %2248 = vmatprep.subr.bf16.mxu1 %v2468_v49  ;;  %v2523_v49 = vld [vmem:[#allocation7 + $0x30] ss:$8 sps:$4 sm:$0xff]  }
  0xa9   :  { %1126 = vmatpush1.bf16.msra.mxu0 %v2409_v33  ;;  %v2505_v33 = vld [vmem:[#allocation5 + $0x438] ss:$12 sps:$4 sm:$0xff]  }
  0xaa   :  { %1127 = vmatprep.subr.bf16.mxu0 %v2416_v36  ;;  %2249 = vmatpush3.bf16.msra.mxu1 %v2472_v52  ;;  %v2513_v36 = vld [vmem:[#allocation5 + $0x46c] ss:$12 sps:$4 sm:$0xff]  }
  0xab   :  { %2250 = vmatprep.subr.bf16.mxu1 %v2473_v53  ;;  %v2531_v52 = vld [vmem:[#allocation7 + $0x54] ss:$8 sps:$4 sm:$0xff]   ;;  %v2529_v53 = vld [vmem:[#allocation7 + $0x50] ss:$8 sps:$4 sm:$0xff]  }
  0xad   :  { %1128 = vmatpush1.bf16.msra.mxu0 %v2414_v37  ;;  %v2511_v37 = vld [vmem:[#allocation5 + $0x468] ss:$12 sps:$4 sm:$0xff]  }
  0xae   :  { %1129 = vmatprep.subr.bf16.mxu0 %v2421_v40  ;;  %2251 = vmatpush3.bf16.msra.mxu1 %v2477_v56  ;;  %v2519_v40 = vld [vmem:[#allocation7 + $0x14] ss:$8 sps:$4 sm:$0xff]  }
  0xaf   :  { %2252 = vmatprep.subr.bf16.mxu1 %v2478_v57  ;;  %v2537_v56 = vld [vmem:[#allocation7 + $0x74] ss:$8 sps:$4 sm:$0xff]   ;;  %v2535_v57 = vld [vmem:[#allocation7 + $0x70] ss:$8 sps:$4 sm:$0xff]  }
  0xb1   :  { %1130 = vmatpush1.bf16.msra.mxu0 %v2419_v41  ;;  %v2517_v41 = vld [vmem:[#allocation7 + $0x10] ss:$8 sps:$4 sm:$0xff]  }
  0xb2   :  { %1131 = vmatprep.subr.bf16.mxu0 %v2426_v44  ;;  %2253 = vmatpush3.bf16.msra.mxu1 %v2482_v59 }
  0xb3   :  { %2284 = vmatprep.subr.bf16.mxu1 %v2751_v4 }
  0xb5   :  { %1132 = vmatpush1.bf16.msra.mxu0 %v2424_v48  ;;  %1347 = vmatmul.mubr.bf16.vlgmr.msra.gmra.mrb[12].mxu1 %v2835_v2  ;;  %v2525_v48 = vld [vmem:[#allocation7 + $0x34] ss:$8 sps:$4 sm:$0xff]  }
  0xb6   :  { %1133 = vmatprep.subr.bf16.mxu0 %v2431_v50  ;;  %2285 = vmatpush3.bf16.msra.mxu1 %v2489_v63  ;;  %v2528_v50 = vld [vmem:[#allocation7 + $0x44] ss:$8 sps:$4 sm:$0xff]  }
  0xb7   :  { %2286 = vmatprep.mubr.msk.bf16.mxu1 %vm2752_vm1, %v2751_v4  ;;  %1700 = vmatprep.subr.bf16.mxu1 %v2516_v39  ;;  %v2540_v63 = vld [vmem:[#allocation7 + $0x84] ss:$8 sps:$4 sm:$0xff]  }
  0xb8   :  { %v2546_v4 = vld [vmem:[#allocation7 + $0xa4] ss:$8 sps:$4 sm:$0xff]  }
  0xb9   :  { %1134 = vmatpush1.bf16.msra.mxu0 %v2429_v51  ;;  %v2526_v51 = vld [vmem:[#allocation7 + $0x40] ss:$8 sps:$4 sm:$0xff]  }
  0xba   :  { %1135 = vmatprep.subr.bf16.mxu0 %v2436_v54  ;;  %v2534_v54 = vld [vmem:[#allocation7 + $0x64] ss:$8 sps:$4 sm:$0xff]  }
  0xbd   :  { %1136 = vmatpush1.bf16.msra.mxu0 %v2434_v55  ;;  %2287 = vmatmul.mubr.msk.bf16.vlgmr.msra.gmra.mrb[16].mxu1 %vm1066_vm0, %v2828_v20  ;;  %v2479_v20 = vld [vmem:[#allocation5 + $0x378] ss:$12 sps:$4 sm:$0xff]  }
  0xbe   :  { %1137 = vmatprep.subr.bf16.mxu0 %v2441_v58  ;;  %1701 = vmatpush1.bf16.msra.mxu1 %v2514_v38  ;;  %v2532_v55 = vld [vmem:[#allocation7 + $0x60] ss:$8 sps:$4 sm:$0xff]  }
  0xbf   :  { %1702 = vmatprep.subr.bf16.mxu1 %v2519_v40 }
  0xc1   :  { %1138 = vmatpush1.bf16.msra.mxu0 %v2439_v61 }
  0xc2   :  { %1139 = vmatprep.subr.bf16.mxu0 %v2446_v62  ;;  %1703 = vmatpush1.bf16.msra.mxu1 %v2517_v41 }
  0xc3   :  { %1704 = vmatprep.subr.bf16.mxu1 %v2522_v43 }
  0xc5   :  { %1140 = vmatpush1.bf16.msra.mxu0 %v2444_v1  ;;  %v2538_v1 = vld [vmem:[#allocation7 + $0x80] ss:$8 sps:$4 sm:$0xff]  }
  0xc6   :  { %1141 = vmatprep.subr.bf16.mxu0 %v2451_v3  ;;  %v2541_v3 = vld [vmem:[#allocation7 + $0x90] ss:$8 sps:$4 sm:$0xff]  }
  0xc9   :  { %1142 = vmatpush1.bf16.msra.mxu0 %v2449_v5  ;;  %v2544_v5 = vld [vmem:[#allocation7 + $0xa0] ss:$8 sps:$4 sm:$0xff]  }
  0xca   :  { %1152 = vmatprep.subr.bf16.mxu0 %v2456_v6  ;;  %v2549_v6 = vld [vmem:[#allocation7 + $0xb4] ss:$8 sps:$4 sm:$0xff]  }
  0xcc   :  { %1144 = vmatmul.mubr.bf16.vlgmr.msra.gmra.mrb[0].mxu0 %v2832_v29  ;;  %v2499_v29 = vld [vmem:[#allocation5 + $0x408] ss:$12 sps:$4 sm:$0xff]  }
  0xcd   :  { %1153 = vmatpush1.bf16.msra.mxu0 %v2454_v7  ;;  %1184 = vmatprep.mubr.bf16.mxu0 %v84_v47  ;;  %v2520_v47 = vld [vmem:[#allocation7 + $0x20] ss:$8 sps:$4 sm:$0xff]   ;;  %v2547_v7 = vld [vmem:[#allocation7 + $0xb0] ss:$8 sps:$4 sm:$0xff]  }
  0xce   :  { %1154 = vmatprep.subr.bf16.mxu0 %v2461_v8  ;;  %1705 = vmatpush1.bf16.msra.mxu1 %v2520_v47  ;;  %v2552_v8 = vld [vmem:[#allocation7 + $0xc4] ss:$8 sps:$4 sm:$0xff]  }
  0xcf   :  { %1706 = vmatprep.subr.bf16.mxu1 %v2525_v48 }
  0xd1   :  { %1155 = vmatpush1.bf16.msra.mxu0 %v2459_v9  ;;  %v2550_v9 = vld [vmem:[#allocation7 + $0xc0] ss:$8 sps:$4 sm:$0xff]  }
  0xd2   :  { %1156 = vmatprep.subr.bf16.mxu0 %v2466_v10  ;;  %1707 = vmatpush1.bf16.msra.mxu1 %v2523_v49  ;;  %v2555_v10 = vld [vmem:[#allocation7 + $0xd4] ss:$8 sps:$4 sm:$0xff]  }
  0xd3   :  { %1708 = vmatprep.subr.bf16.mxu1 %v2528_v50 }
  0xd5   :  { %1157 = vmatpush1.bf16.msra.mxu0 %v2464_v11  ;;  %v2553_v11 = vld [vmem:[#allocation7 + $0xd0] ss:$8 sps:$4 sm:$0xff]  }
  0xd6   :  { %1158 = vmatprep.subr.bf16.mxu0 %v2471_v12  ;;  %1709 = vmatpush1.bf16.msra.mxu1 %v2526_v51  ;;  %v2558_v12 = vld [vmem:[#allocation7 + $0xe4] ss:$8 sps:$4 sm:$0xff]  }
  0xd7   :  { %1710 = vmatprep.subr.bf16.mxu1 %v2531_v52 }
  0xd9   :  { %1159 = vmatpush1.bf16.msra.mxu0 %v2469_v13 }
  0xda   :  { %1160 = vmatprep.subr.bf16.mxu0 %v2476_v14  ;;  %1711 = vmatpush1.bf16.msra.mxu1 %v2529_v53  ;;  %v2556_v14 = vld [vmem:[#allocation7 + $0xe0] ss:$8 sps:$4 sm:$0xff]  }
  0xdb   :  { %1712 = vmatprep.subr.bf16.mxu1 %v2534_v54 }
  0xdd   :  { %1161 = vmatpush1.bf16.msra.mxu0 %v2474_v15 }
  0xde   :  { %1162 = vmatprep.subr.bf16.mxu0 %v2481_v16  ;;  %1713 = vmatpush1.bf16.msra.mxu1 %v2532_v55  ;;  %v2561_v16 = vld [vmem:[#allocation7 + $0xf4] ss:$8 sps:$4 sm:$0xff]  }
  0xdf   :  { %1714 = vmatprep.subr.bf16.mxu1 %v2537_v56  ;;  %v2567_v55 = vld [vmem:[#allocation7 + $0x114] ss:$8 sps:$4 sm:$0xff]   ;;  %v2565_v56 = vld [vmem:[#allocation7 + $0x110] ss:$8 sps:$4 sm:$0xff]  }
  0xe1   :  { %1163 = vmatpush1.bf16.msra.mxu0 %v2479_v20 }
  0xe2   :  { %1164 = vmatprep.subr.bf16.mxu0 %v2485_v17  ;;  %1715 = vmatpush1.bf16.msra.mxu1 %v2535_v57  ;;  %v2570_v57 = vld [vmem:[#allocation7 + $0x124] ss:$8 sps:$4 sm:$0xff]  }
  0xe3   :  { %1716 = vmatprep.subr.bf16.mxu1 %v2540_v63 }
  0xe5   :  { %1165 = vmatpush1.bf16.msra.mxu0 %v2483_v18 }
  0xe6   :  { %1166 = vmatprep.subr.bf16.mxu0 %v2488_v19  ;;  %1717 = vmatpush1.bf16.msra.mxu1 %v2538_v1  ;;  %v2574_v1 = vld [vmem:[#allocation7 + $0x140] ss:$8 sps:$4 sm:$0xff]  }
  0xe9   :  { %1167 = vmatpush1.bf16.msra.mxu0 %v2486_v21  ;;  %v2559_v21 = vld [vmem:[#allocation7 + $0xf0] ss:$8 sps:$4 sm:$0xff]  }
  0xea   :  { %1168 = vmatprep.subr.bf16.mxu0 %v2492_v22  ;;  %v2564_v22 = vld [vmem:[#allocation7 + $0x104] ss:$8 sps:$4 sm:$0xff]  }
  0xed   :  { %1169 = vmatpush1.bf16.msra.mxu0 %v2490_v23 }
  0xee   :  { %1170 = vmatprep.subr.bf16.mxu0 %v2495_v24 }
  0xf1   :  { %1171 = vmatpush1.bf16.msra.mxu0 %v2493_v25 }
  0xf2   :  { %1172 = vmatprep.subr.bf16.mxu0 %v2498_v26 }
  0xf5   :  { %1173 = vmatpush1.bf16.msra.mxu0 %v2496_v27 }
  0xf6   :  { %1174 = vmatprep.subr.bf16.mxu0 %v2501_v28 }
  0xf9   :  { %1175 = vmatpush1.bf16.msra.mxu0 %v2499_v29 }
  0xfa   :  { %1176 = vmatprep.subr.bf16.mxu0 %v2504_v30 }
  0xfd   :  { %1177 = vmatpush1.bf16.msra.mxu0 %v2502_v31 }
  0xfe   :  { %1178 = vmatprep.subr.bf16.mxu0 %v2507_v32 }
 0x101   :  { %1179 = vmatpush1.bf16.msra.mxu0 %v2505_v33 }
 0x102   :  { %1180 = vmatprep.subr.bf16.mxu0 %v2510_v34 }
 0x105   :  { %1181 = vmatpush1.bf16.msra.mxu0 %v2508_v35 }
 0x106   :  { %1182 = vmatprep.subr.bf16.mxu0 %v2513_v36 }
 0x109   :  { %1183 = vmatpush1.bf16.msra.mxu0 %v2511_v37 }
 0x10c   :  { %1185 = vmatmul.mubr.bf16.vlgmr.msra.gmra.mrb[0].mxu0 %v2835_v2  ;;  %v2543_v2 = vld [vmem:[#allocation7 + $0x94] ss:$8 sps:$4 sm:$0xff]  }
 0x10d   :  { %1718 = vmatprep.subr.bf16.mxu1 %v2543_v2  ;;  %v2579_v2 = vld [vmem:[#allocation7 + $0x154] ss:$8 sps:$4 sm:$0xff]  }
 0x10e   :  { %1719 = vmatpush1.bf16.msra.mxu1 %v2541_v3  ;;  %v2577_v3 = vld [vmem:[#allocation7 + $0x150] ss:$8 sps:$4 sm:$0xff]  }
 0x10f   :  { %1720 = vmatprep.subr.bf16.mxu1 %v2546_v4  ;;  %v2580_v4 = vld [vmem:[#allocation7 + $0x160] ss:$8 sps:$4 sm:$0xff]  }
 0x112   :  { %1721 = vmatpush1.bf16.msra.mxu1 %v2544_v5  ;;  %v2585_v5 = vld [vmem:[#allocation7 + $0x174] ss:$8 sps:$4 sm:$0xff]  }
 0x113   :  { %1722 = vmatprep.subr.bf16.mxu1 %v2549_v6  ;;  %v2583_v6 = vld [vmem:[#allocation7 + $0x170] ss:$8 sps:$4 sm:$0xff]  }
 0x116   :  { %1723 = vmatpush1.bf16.msra.mxu1 %v2547_v7 }
 0x117   :  { %1724 = vmatprep.subr.bf16.mxu1 %v2552_v8 }
 0x11a   :  { %1725 = vmatpush1.bf16.msra.mxu1 %v2550_v9  ;;  %v2586_v9 = vld [vmem:[#allocation8 + $0x40] sm:$0xff]  }
 0x11b   :  { %1726 = vmatprep.subr.bf16.mxu1 %v2555_v10  ;;  %v2587_v10 = vld [vmem:[#allocation8] sm:$0xff]   ;;  %2262 = vmatprep.subr.bf16.mxu0 %v2586_v9 }
 0x11c   :  { %2263 = vmatpush3.bf16.msra.mxu0 %v2587_v10 }
 0x11e   :  { %1727 = vmatpush1.bf16.msra.mxu1 %v2553_v11  ;;  %v2588_v11 = vld [vmem:[#allocation8 + $0x48] sm:$0xff]  }
 0x11f   :  { %1728 = vmatprep.subr.bf16.mxu1 %v2558_v12  ;;  %v2589_v12 = vld [vmem:[#allocation8 + $0x8] sm:$0xff]   ;;  %2264 = vmatprep.subr.bf16.mxu0 %v2588_v11 }
 0x120   :  { %2265 = vmatpush3.bf16.msra.mxu0 %v2589_v12 }
 0x122   :  { %1729 = vmatpush1.bf16.msra.mxu1 %v2556_v14  ;;  %v2591_v14 = vld [vmem:[#allocation8 + $0x10] sm:$0xff]  }
 0x123   :  { %1730 = vmatprep.subr.bf16.mxu1 %v2561_v16  ;;  %v2593_v16 = vld [vmem:[#allocation8 + $0x18] sm:$0xff]  }
 0x126   :  { %1731 = vmatpush1.bf16.msra.mxu1 %v2559_v21  ;;  %v2598_v21 = vld [vmem:[#allocation8 + $0x70] sm:$0xff]  }
 0x127   :  { %v2842_v42 = vpop.f32.mrb[0].mxu1  ;;  %1741 = vmatprep.subr.bf16.mxu1 %v2564_v22  ;;  %v2599_v22 = vld [vmem:[#allocation8 + $0x30] sm:$0xff]  }
 0x128   :  { %v2844_v44 = vpop.f32.mrb[1].mxu1 }
 0x129   :  { %v1231_v45 = vpop.f32.mrb[2].mxu1 }
 0x12a   :  { %v1232_v46 = vpop.f32.mrb[3].mxu1 }
 0x147   :  { %v2210_v58 = vpop.f32.mrb[4].mxu1 }
 0x148   :  { %v2211_v59 = vpop.f32.mrb[5].mxu1 }
 0x149   :  { %v2212_v60 = vadd.f32 %v2211_v59, %v2210_v58  ;;  %v2213_v61 = vpop.f32.mrb[6].mxu1  ;;  %v2568_v58 = vld [vmem:[#allocation7 + $0x120] ss:$8 sps:$4 sm:$0xff]   ;;  %v2573_v59 = vld [vmem:[#allocation7 + $0x134] ss:$8 sps:$4 sm:$0xff]  }
 0x14a   :  { %v2214_v62 = vpop.f32.mrb[7].mxu1 }
 0x14b   :  { %v2576_v62 = vld [vmem:[#allocation7 + $0x144] ss:$8 sps:$4 sm:$0xff]  }
 0x168   :  { %v2232_v13 = vpop.f32.mrb[8].mxu1 }
 0x169   :  { %v2233_v15 = vpop.f32.mrb[9].mxu1 }
 0x16a   :  { %v2234_v20 = vadd.f32 %v2233_v15, %v2232_v13  ;;  %v2235_v17 = vpop.f32.mrb[10].mxu1  ;;  %v2590_v13 = vld [vmem:[#allocation8 + $0x50] sm:$0xff]   ;;  %v2592_v15 = vld [vmem:[#allocation8 + $0x58] sm:$0xff]  }
 0x16b   :  { %v2236_v18 = vpop.f32.mrb[11].mxu1  ;;  %2266 = vmatprep.subr.bf16.mxu0 %v2590_v13  ;;  %v2595_v17 = vld [vmem:[#allocation8 + $0x20] sm:$0xff]  }
 0x16c   :  { %v1309_v19 = vadd.f32 %v2234_v20, %v2212_v60  ;;  %v2571_v60 = vld [vmem:[#allocation7 + $0x130] ss:$8 sps:$4 sm:$0xff]   ;;  %2267 = vmatpush3.bf16.msra.mxu0 %v2591_v14  ;;  %v2594_v20 = vld [vmem:[#allocation8 + $0x60] sm:$0xff]   ;;  %v2596_v18 = vld [vmem:[#allocation8 + $0x68] sm:$0xff]  }
 0x16d   :  { %2268 = vmatprep.subr.bf16.mxu0 %v2592_v15 }
 0x170   :  { %2269 = vmatpush3.bf16.msra.mxu0 %v2593_v16 }
 0x171   :  { %2270 = vmatprep.subr.bf16.mxu0 %v2594_v20 }
 0x174   :  { %2271 = vmatpush3.bf16.msra.mxu0 %v2595_v17 }
 0x175   :  { %2272 = vmatprep.subr.bf16.mxu0 %v2596_v18 }
 0x188   :  { %v2254_v23 = vpop.f32.mrb[12].mxu1 }
 0x189   :  { %v2255_v24 = vpop.f32.mrb[13].mxu1 }
 0x18a   :  { %v2256_v25 = vadd.f32 %v2255_v24, %v2254_v23  ;;  %v2257_v26 = vpop.f32.mrb[14].mxu1  ;;  %v2600_v23 = vld [vmem:[#allocation8 + $0x78] sm:$0xff]  }
 0x18b   :  { %v2258_v27 = vpop.f32.mrb[15].mxu1  ;;  %v2601_v24 = vld [vmem:[#allocation8 + $0x38] sm:$0xff]  }
 0x18c   :  { %v1349_v28 = vadd.f32 %v2256_v25, %v1309_v19  ;;  %v2597_v19 = vld [vmem:[#allocation8 + $0x28] sm:$0xff]  }
 0x18d   :  { %2273 = vmatpush3.bf16.msra.mxu0 %v2597_v19 }
 0x18e   :  { %2274 = vmatprep.subr.bf16.mxu0 %v2598_v21 }
 0x190   :  { %v1388_v29 = vpop.f32.mrb[16].mxu1 }
 0x191   :  { %v1389_v30 = vadd.f32 %v1388_v29, %v1349_v28  ;;  %v2288_v31 = vpop.f32.mrb[17].mxu1  ;;  %2275 = vmatpush3.bf16.msra.mxu0 %v2599_v22 }
 0x192   :  { %v1391_v32 = vpop.f32.mrb[18].mxu1  ;;  %2276 = vmatprep.subr.bf16.mxu0 %v2600_v23 }
 0x193   :  { %v2289_v33 = vpop.f32.mrb[19].mxu1  ;;  %v1396_v50 = vsub.f32 0.0, %v1389_v30 }
 0x195   :  { %v1401_v52 = vmul.f32 1.442695, %v1396_v50  ;;  %2277 = vmatpush3.bf16.msra.mxu0 %v2601_v24 }
 0x1df   :  { %v1186_v34 = vpop.f32.mrb[0].mxu0 }
 0x1e0   :  { %v2290_v35 = vadd.f32 %v2842_v42, %v1186_v34  ;;  %v1188_v36 = vpop.f32.mrb[1].mxu0 }
 0x1e1   :  { %v2291_v37 = vadd.f32 %v2844_v44, %v1188_v36  ;;  %v1190_v38 = vpop.f32.mrb[2].mxu0  ;;  %v2562_v44 = vld [vmem:[#allocation7 + $0x100] ss:$8 sps:$4 sm:$0xff]  }
 0x1e2   :  { %v1394_v39 = vsub.f32 0.0, %v2290_v35  ;;  %v1191_v40 = vpop.f32.mrb[3].mxu0 }
 0x1e3   :  { %v1395_v41 = vsub.f32 0.0, %v2291_v37 }
 0x1e4   :  { %v1397_v43 = vmul.f32 1.442695, %v1394_v39 }
 0x1e5   :  { %v1399_v45 = vmul.f32 1.442695, %v1395_v41 }
 0x1e6   :  { %2602 = vpow2.f32 %v1397_v43 }
 0x1e7   :  { %2604 = vpow2.f32 %v1399_v45 }
 0x1f0   :  { %v2603_v46 = vpop.eup %2602 }
 0x1f1   :  { %v2605_v47 = vpop.eup %2604  ;;  %v1403_v48 = vadd.f32 1.0, %v2603_v46 }
 0x1f2   :  { %v1404_v49 = vadd.f32 1.0, %v2605_v47 }
 0x1f3   :  { %2606 = vrcp.f32 %v1403_v48 }
 0x1f4   :  { %2608 = vrcp.f32 %v1404_v49 }
 0x1f5   :  { %2610 = vpow2.f32 %v1401_v52 }
 0x1fd   :  { %v2607_v51 = vpop.eup %2606 }
 0x1fe   :  { %v2609_v42 = vpop.eup %2608  ;;  %v1409_v54 = vpack.c.bf16 %v2607_v51, %v2607_v51 }
 0x1ff   :  { %v1410_v53 = vpack.c.bf16 %v2609_v42, %v2609_v42  ;;  %v2611_v61 = vpop.eup %2610 }
 0x200   :  { %v1405_v63 = vadd.f32 1.0, %v2611_v61 }
 0x201   :  { %1732 = vmatprep.mubr.bf16.mxu1 %v1410_v53 }
 0x202   :  { %1733 = vmatmul.mubr.bf16.vlgmr.msra.gmra.mrb[20].mxu1 %v1409_v54  ;;  %2612 = vrcp.f32 %v1405_v63 }
 0x203   :  { %1742 = vmatpush1.bf16.msra.mxu1 %v2562_v44  ;;  %1773 = vmatprep.mubr.bf16.mxu1 %v2750_v0  ;;  %v2582_v0 = vld [vmem:[#allocation7 + $0x164] ss:$8 sps:$4 sm:$0xff]  }
 0x204   :  { %1743 = vmatprep.subr.bf16.mxu1 %v2567_v55 }
 0x207   :  { %1744 = vmatpush1.bf16.msra.mxu1 %v2565_v56 }
 0x208   :  { %1745 = vmatprep.subr.bf16.mxu1 %v2570_v57 }
 0x20b   :  { %1746 = vmatpush1.bf16.msra.mxu1 %v2568_v58 }
 0x20c   :  { %1747 = vmatprep.subr.bf16.mxu1 %v2573_v59  ;;  %v2613_v7 = vpop.eup %2612 }
 0x20d   :  { %v1411_v8 = vpack.c.bf16 %v2613_v7, %v2613_v7 }
 0x20f   :  { %1748 = vmatpush1.bf16.msra.mxu1 %v2571_v60 }
 0x210   :  { %1749 = vmatprep.subr.bf16.mxu1 %v2576_v62 }
 0x213   :  { %1750 = vmatpush1.bf16.msra.mxu1 %v2574_v1 }
 0x214   :  { %1751 = vmatprep.subr.bf16.mxu1 %v2579_v2 }
 0x217   :  { %1752 = vmatpush1.bf16.msra.mxu1 %v2577_v3 }
 0x218   :  { %1753 = vmatprep.subr.bf16.mxu1 %v2582_v0 }
 0x21b   :  { %1754 = vmatpush1.bf16.msra.mxu1 %v2580_v4 }
 0x21c   :  { %1755 = vmatprep.subr.bf16.mxu1 %v2585_v5 }
 0x21f   :  { %1756 = vmatpush1.bf16.msra.mxu1 %v2583_v6 }
 0x222   :  { %1774 = vmatmul.mubr.bf16.vlgmr.msra.gmra.mrb[20].mxu1 %v1411_v8 }
 0x2f5   :  { %v1775_v25 = vpop.f32.mrb[20].mxu1 }
 0x2f6   :  { %v1782_v26 = vsub.f32 0.0, %v1775_v25  ;;  %v1777_v27 = vpop.f32.mrb[21].mxu1 }
 0x2f7   :  { %v1783_v28 = vsub.f32 0.0, %v1777_v27  ;;  %v1779_v29 = vpop.f32.mrb[22].mxu1 }
 0x2f8   :  { %v1784_v30 = vmul.f32 1.442695, %v1782_v26  ;;  %v1780_v31 = vpop.f32.mrb[23].mxu1 }
 0x2f9   :  { %v1786_v32 = vmul.f32 1.442695, %v1783_v28 }
 0x2fa   :  { %2614 = vpow2.f32 %v1784_v30 }
 0x2fb   :  { %2616 = vpow2.f32 %v1786_v32 }
 0x304   :  { %v2615_v33 = vpop.eup %2614 }
 0x305   :  { %v2617_v34 = vpop.eup %2616  ;;  %v1788_v35 = vadd.f32 1.0, %v2615_v33 }
 0x306   :  { %v1789_v36 = vadd.f32 1.0, %v2617_v34 }
 0x307   :  { %2618 = vrcp.f32 %v1788_v35 }
 0x308   :  { %2620 = vrcp.f32 %v1789_v36 }
 0x311   :  { %v2619_v37 = vpop.eup %2618 }
 0x312   :  { %v2621_v38 = vpop.eup %2620  ;;  %v1792_v40 = vpack.c.bf16 %v2619_v37, %v2619_v37 }
 0x313   :  { %v1793_v39 = vpack.c.bf16 %v2621_v38, %v2621_v38 }
 0x315   :  { %1954 = vmatprep.mubr.bf16.mxu0 %v1793_v39 }
 0x316   :  { %1955 = vmatmul.mubr.bf16.vlgmr.msra.gmra.mrb[4].mxu0 %v1792_v40 }
 0x3e9   :  { %v2278_v41 = vpop.f32.mrb[4].mxu0 }
 0x3ea   :  { %v2279_v43 = vpop.f32.mrb[5].mxu0 }
 0x3eb   :  { %v2280_v45 = vadd.f32 %v2279_v43, %v2278_v41  ;;  %v2281_v46 = vpop.f32.mrb[6].mxu0 }
 0x3ec   :  { %v2282_v47 = vpop.f32.mrb[7].mxu0 }
 0x3ed   :  { %v1962_v48 = vpack.c.bf16 %v2280_v45, %v2280_v45 }
 0x3ef   :  { %1963 = vst [vmem:[#allocation10] sm:$0xf] %v1962_v48 }
 0x3f0   :  { %2721 = shalt.err (!%p2718_p8)
}
 0x3f1   :  { %s2722_s17 = scalar_lea.hbm %s2865_s4, 64 }
 0x3f2   :  { %p2723_p9 = scmp.ne.s32.totalorder %s2865_s4, %s2722_s17  ;;  %p2726_p10 = scmp.lt.u32.totalorder %s2722_s17, %s2865_s4 }
 0x3f4   :  { %p2728_p11 = pnand %p2726_p10, %p2723_p9 }
 0x3f6   :  { %2731 = shalt.err (!%p2728_p11)
}
 0x3f7   :  { %1973 = dma.vmem_to_hbm [thread:$0]  %s1971_s1, 64, %s2865_s4, [#allocation4]  }
 0x3f8   :  { %2738 = dma.done.wait [#allocation4], 64  }
 0x3f9   :  { %2739 = vsyncadd [#allocation4], 4294967232 }
 0x3fa   :  { %1977 = vsyncpa [#allocation3], 1 }
 0x3fb   :  { %1978 = vsyncpa [#allocation6], 1 }
 0x3fc   :  { %1979 = vsyncpa [#allocation9], 1 }
 0x3fd   :  { %1980 = vsyncpa [#allocation4], 1 }

</bundles_post_ra>
